<compile_context>
chip_gen: v5e
topology: v5e:2x2
jax: 0.10.0
libtpu: 0.0.40
codegen_flags: <defaults>
</compile_context>

<pallas_src>
import functools

import jax
import jax.numpy as jnp
from jax.experimental import pallas as pl
from jax.experimental.pallas import tpu as pltpu

_MIB = 1024 * 1024


# ----------------------------------------------------------------------------
# Block-size selection (bytes-per-step, VMEM- and generation-aware)
# ----------------------------------------------------------------------------
def _vmem_capacity_bytes():
    try:
        return int(pltpu.get_tpu_info().vmem_capacity_bytes)   # 64 MiB on v7x
    except Exception:
        return 128 * _MIB                                       # v5e / v6e


def _choose_block(n, c, hw, itemsize):
    """Pick (bn, tile_hw, vmem_limit): block bn batch items x tile_hw lanes per
    grid step so each step moves >=~1 MiB of input (amortizing ~0.35us per-step
    overhead) while a conservative working-set estimate stays inside VMEM."""
    vmem_cap = _vmem_capacity_bytes()
    c8 = max(int(c), 8)
    bytes_per_pixel = (2 * (c * itemsize + 4)   # double-buffered logits+target
                       + 3 * c8 * 4             # f32 upcast / exp / slab temps
                       + 6 * 32                 # live (.,1,thw) f32 row temps
                       + 2 * 32)                # two (1,tile_hw) scratch accs
    budget = min(vmem_cap // 3, 40 * _MIB)
    max_pixels = max(128, budget // bytes_per_pixel)
    # Cap raw input per step at ~4 MiB: firmly DMA-bound, short serial tail.
    max_pixels = min(max_pixels, max(128, (4 * _MIB) // (c * itemsize + 4)))

    if hw <= max_pixels:
        tile_hw = int(hw)                        # full HW dim (128-rule exempt)
        bn = int(max(1, min(n, 128, max_pixels // max(hw, 1))))
    else:
        bn = 1
        tile_hw = int(max(128, (max_pixels // 128) * 128))

    vmem_limit = int(min(vmem_cap * 3 // 4, 96 * _MIB))
    return bn, tile_hw, vmem_limit


# ----------------------------------------------------------------------------
# Kernel
# ----------------------------------------------------------------------------
def _focal_loss_kernel(logits_ref, target_ref, focal_out_ref, alpha_out_ref,
                       focal_acc, alpha_acc, *,
                       alpha_vals, gamma, epsilon, smooth,
                       n_total, bn, hw, tile_hw, mask_n, mask_hw):
    nb = pl.program_id(0)                   # batch-block  ("parallel")
    t = pl.program_id(1)                    # HW tile      ("arbitrary")
    num_class = len(alpha_vals)

    @pl.when(t == 0)
    def _():
        focal_acc[...] = jnp.zeros_like(focal_acc)
        alpha_acc[...] = jnp.zeros_like(alpha_acc)

    x = logits_ref[...].astype(jnp.float32)          # (bn, C, tile_hw)
    tgt = target_ref[...].astype(jnp.int32)          # (bn, 1, tile_hw)

    # log-sum-exp over the small class (sublane) axis: no softmax divide.
    m = jnp.max(x, axis=1, keepdims=True)
    lse = m + jnp.log(jnp.sum(jnp.exp(x - m), axis=1, keepdims=True))

    if num_class <= 32:
        # Target-class logit and alpha[target] via short select chains against
        # baked-in immediates: no (C, tile_hw) one-hot multiply, no extra
        # cross-sublane XLU reduce, no per-step alpha broadcast from VMEM.
        x_t = jnp.zeros((bn, 1, tile_hw), jnp.float32)
        alpha_t = jnp.zeros((bn, 1, tile_hw), jnp.float32)
        for c in range(num_class):
            sel = tgt == c
            x_t = jnp.where(sel, x[:, c:c + 1, :], x_t)
            alpha_t = jnp.where(sel, alpha_vals[c], alpha_t)
    else:
        cls = jax.lax.broadcasted_iota(jnp.int32, x.shape, 1)
        onehot = (cls == tgt).astype(jnp.float32)
        x_t = jnp.sum(onehot * x, axis=1, keepdims=True)
        alpha_arr = jnp.asarray(alpha_vals, jnp.float32).reshape(1, num_class, 1)
        alpha_t = jnp.sum(onehot * alpha_arr, axis=1, keepdims=True)

    # Keep parity with the reference's `pt = p + 1e-10; log(pt)` quirk (dropping
    # the exp/log pair and using logpt = x_t - lse would shave ~2 EUP ops/pixel).
    p_t = jnp.exp(x_t - lse)
    if smooth:
        # clamp(one_hot, s, 1-s) . softmax  ==  (1-s)*p_t + s*(1-p_t)
        p_t = (1.0 - smooth) * p_t + smooth * (1.0 - p_t)
    pt = p_t + epsilon
    logpt = jnp.log(pt)

    one_minus = 1.0 - pt
    if float(gamma) == int(gamma) and int(gamma) >= 0:
        # Integer gamma (default 2): VPU multiply chain; exact reference parity
        # even when pt marginally exceeds 1 (no clamp).
        fpow = jnp.ones_like(one_minus)
        for _ in range(int(gamma)):
            fpow = fpow * one_minus
    else:
        # Fractional gamma: clamp so pow() does not NaN when pt > 1 by epsilon.
        fpow = jnp.power(jnp.maximum(one_minus, 0.0), gamma)
    focal = -fpow * logpt                                    # (bn, 1, tile_hw)

    # Ragged batch / HW tails: MUST stay a select (jnp.where) -- out-of-bounds
    # lanes hold garbage that may have produced NaN/Inf above; a multiplicative
    # mask would propagate it into the sums.
    if mask_n or mask_hw:
        valid = None
        if mask_n:
            bidx = jax.lax.broadcasted_iota(jnp.int32, (bn, 1, tile_hw), 0)
            valid = (nb * bn + bidx) < n_total
        if mask_hw:
            lidx = jax.lax.broadcasted_iota(jnp.int32, (bn, 1, tile_hw), 2)
            vhw = (t * tile_hw + lidx) < hw
            valid = vhw if valid is None else (valid & vhw)
        focal = jnp.where(valid, focal, 0.0)
        alpha_t = jnp.where(valid, alpha_t, 0.0)

    # Lane-wise VPU accumulation every step; cross-lane XLU reduce + output
    # store only once per batch-block (last HW tile).
    focal_acc[...] = focal_acc[...] + jnp.sum(focal, axis=0)
    alpha_acc[...] = alpha_acc[...] + jnp.sum(alpha_t, axis=0)

    @pl.when(t == pl.num_programs(1) - 1)
    def _():
        focal_out_ref[...] = jnp.zeros_like(focal_out_ref) + jnp.sum(focal_acc[...])
        alpha_out_ref[...] = jnp.zeros_like(alpha_out_ref) + jnp.sum(alpha_acc[...])


def _focal_loss_sums(logits, target, alpha_vals, gamma, smooth,
                     block_override=None):
    """logits: (N, C, HW) float; target: (N, 1, HW) int32; alpha_vals: tuple of
    Python floats (len C).  Returns (sum_j focal_j, sum_i alpha[target_i])."""
    N, C, HW = logits.shape
    if len(alpha_vals) != C:
        raise ValueError("num_class must match the channel dimension")
    itemsize = jnp.dtype(logits.dtype).itemsize
    bn_auto, thw_auto, vmem_limit = _choose_block(N, C, HW, itemsize)
    if block_override is None:
        bn, tile_hw = bn_auto, thw_auto
    else:
        bn, tile_hw = block_override
    NB = (N + bn - 1) // bn
    num_t = (HW + tile_hw - 1) // tile_hw

    kernel = functools.partial(
        _focal_loss_kernel,
        alpha_vals=tuple(float(v) for v in alpha_vals),
        gamma=float(gamma), epsilon=1e-10, smooth=smooth,
        n_total=int(N), bn=int(bn), hw=int(HW), tile_hw=int(tile_hw),
        mask_n=(N % bn != 0), mask_hw=(HW % tile_hw != 0))

    pixels = N * HW
    cost = pl.CostEstimate(
        flops=int(pixels * (6 * C + 30)),
        transcendentals=int(pixels * (C + 3)),
        bytes_accessed=int(logits.size * itemsize + target.size * 4
                           + 2 * NB * 8 * 128 * 4))

    focal_p, alpha_p = pl.pallas_call(
        kernel,
        grid=(NB, num_t),
        in_specs=[
            pl.BlockSpec((bn, C, tile_hw), lambda n, t: (n, 0, t)),   # logits
            pl.BlockSpec((bn, 1, tile_hw), lambda n, t: (n, 0, t)),   # target
        ],
        out_specs=[
            pl.BlockSpec((1, 8, 128), lambda n, t: (n, 0, 0)),
            pl.BlockSpec((1, 8, 128), lambda n, t: (n, 0, 0)),
        ],
        out_shape=[
            jax.ShapeDtypeStruct((NB, 8, 128), jnp.float32),
            jax.ShapeDtypeStruct((NB, 8, 128), jnp.float32),
        ],
        scratch_shapes=[
            pltpu.VMEM((1, tile_hw), jnp.float32),
            pltpu.VMEM((1, tile_hw), jnp.float32),
        ],
        compiler_params=pltpu.CompilerParams(
            dimension_semantics=("parallel", "arbitrary"),
            vmem_limit_bytes=vmem_limit),
        cost_estimate=cost,
    )(logits, target)

    return jnp.sum(focal_p[:, 0, 0]), jnp.sum(alpha_p[:, 0, 0])


# ----------------------------------------------------------------------------
# Module-equivalent wrapper
# ----------------------------------------------------------------------------
class FocalLoss:
    """JAX/Pallas port of the PyTorch FocalLoss module (forward only)."""

    def __init__(self, num_class=2, alpha=0.6, gamma=2, balance_index=0,
                 smooth=None, size_average=True):
        self.num_class = num_class
        self.gamma = gamma
        self.smooth = smooth
        self.size_average = size_average
        if alpha is None:
            a = [1.0] * num_class
        elif isinstance(alpha, (list, tuple)):
            assert len(alpha) == num_class
            s = float(sum(alpha))
            a = [float(v) / s for v in alpha]
        elif isinstance(alpha, float):
            a = [1.0 - alpha] * num_class
            a[balance_index] = float(alpha)
        else:
            raise TypeError('Not support alpha type')
        # alpha is module config (not a traced input): baked into the kernel as
        # immediates; keep a jnp copy for external use / the reference.
        self._alpha_vals = tuple(a)
        self.alpha = jnp.asarray(a, jnp.float32)
        if self.smooth is not None:
            if self.smooth < 0 or self.smooth > 1.0:
                raise ValueError('smooth value should be in [0,1]')

    def __call__(self, inputs, target, *, _block_override=None):
        if inputs.ndim > 2:
            N, C = inputs.shape[0], inputs.shape[1]
            logits = inputs.reshape(N, C, -1)        # free reshape, no copy
        else:
            # 2-D path: one "pixel" per row; the transpose is a full HBM copy
            # but this path is rarely hot for this module.
            C = inputs.shape[1]
            logits = inputs.T.reshape(1, C, -1)
            N = 1
        HW = logits.shape[2]
        M = N * HW
        tgt = target.reshape(N, 1, HW).astype(jnp.int32)

        # PyTorch truthiness quirk: smooth == 0.0 behaves like smooth is None
        # (numerically identical anyway).
        smooth = float(self.smooth) if self.smooth else None

        focal_sum, alpha_sum = _focal_loss_sums(
            logits, tgt, self._alpha_vals, float(self.gamma), smooth,
            block_override=_block_override)

        # Reference broadcasting quirk: loss tensor is (M, 1, M), so
        #   sum  = (sum_i alpha[t_i]) * (sum_j focal_j)   and   mean = sum / M^2.
        prod = alpha_sum * focal_sum
        if self.size_average:
            return prod / jnp.float32(M) / jnp.float32(M)
        return prod


# ----------------------------------------------------------------------------
# Pure-JAX reference (mirrors the PyTorch forward, including broadcasting)
# ----------------------------------------------------------------------------
def _focal_loss_ref(inputs, target, alpha_vec, gamma, smooth=None,
                    size_average=True):
    N, C = inputs.shape[0], inputs.shape[1]
    logit = jax.nn.softmax(inputs.astype(jnp.float32), axis=1)
    if inputs.ndim > 2:
        logit = jnp.moveaxis(logit.reshape(N, C, -1), 1, 2).reshape(-1, C)
    tgt = target.reshape(-1, 1).astype(jnp.int32)
    onehot = jax.nn.one_hot(tgt[:, 0], C, dtype=jnp.float32)
    if smooth:
        onehot = jnp.clip(onehot, smooth, 1.0 - smooth)
    pt = (onehot * logit).sum(1) + 1e-10
    logpt = jnp.log(pt)
    alpha = jnp.asarray(alpha_vec, jnp.float32).reshape(C, 1)[tgt]    # (M,1,1)
    loss = -1.0 * alpha * jnp.power(1.0 - pt, gamma) * logpt          # (M,1,M)
    return loss.mean() if size_average else loss.sum()


if __name__ == "__main__":
    key = jax.random.PRNGKey(0)
    k1, k2, k3, k4, k5, k6 = jax.random.split(key, 6)

    # Check 1: default module config, NCHW logits (batch items folded into one
    # lane-dense block, single grid step).
    N, C, H, W = 2, 4, 16, 16
    x = jax.random.normal(k1, (N, C, H, W), jnp.float32)
    tgt = jax.random.randint(k2, (N, H, W), 0, C, jnp.int32)
    mod = FocalLoss(num_class=C, alpha=0.6, gamma=2, balance_index=0,
                    smooth=None, size_average=True)
    out = jax.block_until_ready(mod(x, tgt))
    ref = _focal_loss_ref(x, tgt, mod.alpha, 2, None, True)
    assert jnp.allclose(out, ref, rtol=1e-5, atol=1e-6), (out, ref)

    # Check 2: list alpha, gamma=3, sum reduction, odd H*W (= 169 lanes).
    N2, C2, H2, W2 = 2, 3, 13, 13
    x2 = jax.random.normal(k3, (N2, C2, H2, W2), jnp.float32)
    t2 = jax.random.randint(k4, (N2, H2, W2), 0, C2, jnp.int32)
    mod2 = FocalLoss(num_class=C2, alpha=[0.2, 0.3, 0.5], gamma=3,
                     balance_index=0, smooth=None, size_average=False)
    out2 = jax.block_until_ready(mod2(x2, t2))
    ref2 = _focal_loss_ref(x2, t2, mod2.alpha, 3, None, False)
    assert jnp.allclose(out2, ref2, rtol=1e-5, atol=1e-5), (out2, ref2)

    # Check 3: force a tiny block (bn=2, tile_hw=128) so the multi-step scratch
    # accumulation, ragged-lane masking, ragged-batch masking and label
    # smoothing paths all run.
    N3, C3, H3, W3 = 3, 4, 13, 13
    x3 = jax.random.normal(k5, (N3, C3, H3, W3), jnp.float32)
    t3 = jax.random.randint(k6, (N3, H3, W3), 0, C3, jnp.int32)
    mod3 = FocalLoss(num_class=C3, alpha=0.25, gamma=2, balance_index=1,
                     smooth=0.1, size_average=True)
    out3 = jax.block_until_ready(mod3(x3, t3, _block_override=(2, 128)))
    ref3 = _focal_loss_ref(x3, t3, mod3.alpha, 2, 0.1, True)
    assert jnp.allclose(out3, ref3, rtol=1e-5, atol=1e-6), (out3, ref3)

    print("KERNEL_OK")
</pallas_src>

<mosaic_0001>
module attributes {stable_mosaic.version = 11 : i64} {
  func.func @_focal_loss_kernel(%arg0: i32, %arg1: i32, %arg2: memref<2x4x256xf32, #tpu.memory_space<vmem>>, %arg3: memref<2x1x256xi32, #tpu.memory_space<vmem>>, %arg4: memref<1x8x128xf32, #tpu.memory_space<vmem>>, %arg5: memref<1x8x128xf32, #tpu.memory_space<vmem>>, %arg6: memref<1x256xf32, #tpu.memory_space<vmem>>, %arg7: memref<1x256xf32, #tpu.memory_space<vmem>>) attributes {dimension_semantics = [#tpu.dimension_semantics<parallel>, #tpu.dimension_semantics<arbitrary>], iteration_bounds = array<i64: 1, 1>, scalar_prefetch = 0 : i64, scratch_operands = 2 : i64, tpu.core_type = #tpu.core_type<tc>, window_params = [{transform_indices = @transform_0, window_bounds = array<i64: 2, 4, 256>}, {transform_indices = @transform_1, window_bounds = array<i64: 2, 1, 256>}, {transform_indices = @transform_2, window_bounds = array<i64: 1, 8, 128>}, {transform_indices = @transform_3, window_bounds = array<i64: 1, 8, 128>}]} {
    %c0_i32 = arith.constant 0 : i32
    %0 = arith.cmpi eq, %arg1, %c0_i32 : i32
    %1 = arith.extui %0 : i1 to i32
    %c0_i32_0 = arith.constant 0 : i32
    %2 = arith.cmpi ne, %1, %c0_i32_0 : i32
    scf.if %2 {
      %cst_30 = arith.constant 0.000000e+00 : f32
      %64 = vector.broadcast %cst_30 : f32 to vector<1x256xf32>
      %c0_31 = arith.constant 0 : index
      %c0_32 = arith.constant 0 : index
      %65 = vector.load %arg6[%c0_31, %c0_32] : memref<1x256xf32, #tpu.memory_space<vmem>>, vector<1x256xf32>
      tpu.vector_store %arg6[%c0_31, %c0_32], %64 {strides = array<i32>} : memref<1x256xf32, #tpu.memory_space<vmem>>, vector<1x256xf32>,
      %cst_33 = arith.constant 0.000000e+00 : f32
      %66 = vector.broadcast %cst_33 : f32 to vector<1x256xf32>
      %c0_34 = arith.constant 0 : index
      %c0_35 = arith.constant 0 : index
      %67 = vector.load %arg7[%c0_34, %c0_35] : memref<1x256xf32, #tpu.memory_space<vmem>>, vector<1x256xf32>
      tpu.vector_store %arg7[%c0_34, %c0_35], %66 {strides = array<i32>} : memref<1x256xf32, #tpu.memory_space<vmem>>, vector<1x256xf32>,
    } else {
    }
    %c0 = arith.constant 0 : index
    %c0_1 = arith.constant 0 : index
    %c0_2 = arith.constant 0 : index
    %3 = vector.load %arg2[%c0, %c0_1, %c0_2] : memref<2x4x256xf32, #tpu.memory_space<vmem>>, vector<2x4x256xf32>
    %c0_3 = arith.constant 0 : index
    %c0_4 = arith.constant 0 : index
    %c0_5 = arith.constant 0 : index
    %4 = vector.load %arg3[%c0_3, %c0_4, %c0_5] : memref<2x1x256xi32, #tpu.memory_space<vmem>>, vector<2x1x256xi32>
    %cst = arith.constant dense<0xFF800000> : vector<2x256xf32>
    %5 = vector.multi_reduction <maximumf>, %3, %cst [1] : vector<2x4x256xf32> to vector<2x256xf32>
    %6 = vector.shape_cast %5 : vector<2x256xf32> to vector<2x1x256xf32>
    %7 = vector.broadcast %6 : vector<2x1x256xf32> to vector<2x4x256xf32>
    %8 = arith.subf %3, %7 : vector<2x4x256xf32>
    %9 = math.exp %8 : vector<2x4x256xf32>
    %cst_6 = arith.constant dense<0.000000e+00> : vector<2x256xf32>
    %10 = vector.multi_reduction <add>, %9, %cst_6 [1] : vector<2x4x256xf32> to vector<2x256xf32>
    %11 = vector.shape_cast %10 : vector<2x256xf32> to vector<2x1x256xf32>
    %12 = math.log %11 : vector<2x1x256xf32>
    %13 = arith.addf %6, %12 : vector<2x1x256xf32>
    %cst_7 = arith.constant 0.000000e+00 : f32
    %14 = vector.broadcast %cst_7 : f32 to vector<2x1x256xf32>
    %cst_8 = arith.constant 0.000000e+00 : f32
    %15 = vector.broadcast %cst_8 : f32 to vector<2x1x256xf32>
    %c0_i32_9 = arith.constant 0 : i32
    %16 = vector.broadcast %c0_i32_9 : i32 to vector<2x1x256xi32>
    %17 = arith.cmpi eq, %4, %16 : vector<2x1x256xi32>
    %18 = vector.extract_strided_slice %3 {offsets = [0, 0, 0], sizes = [2, 1, 256], strides = [1, 1, 1]} : vector<2x4x256xf32> to vector<2x1x256xf32>
    %19 = arith.select %17, %18, %14 : vector<2x1x256xi1>, vector<2x1x256xf32>
    %cst_10 = arith.constant 6.000000e-01 : f32
    %20 = vector.broadcast %cst_10 : f32 to vector<2x1x256xf32>
    %21 = arith.select %17, %20, %15 : vector<2x1x256xi1>, vector<2x1x256xf32>
    %c1_i32 = arith.constant 1 : i32
    %22 = vector.broadcast %c1_i32 : i32 to vector<2x1x256xi32>
    %23 = arith.cmpi eq, %4, %22 : vector<2x1x256xi32>
    %24 = vector.extract_strided_slice %3 {offsets = [0, 1, 0], sizes = [2, 1, 256], strides = [1, 1, 1]} : vector<2x4x256xf32> to vector<2x1x256xf32>
    %25 = arith.select %23, %24, %19 : vector<2x1x256xi1>, vector<2x1x256xf32>
    %cst_11 = arith.constant 4.000000e-01 : f32
    %26 = vector.broadcast %cst_11 : f32 to vector<2x1x256xf32>
    %27 = arith.select %23, %26, %21 : vector<2x1x256xi1>, vector<2x1x256xf32>
    %c2_i32 = arith.constant 2 : i32
    %28 = vector.broadcast %c2_i32 : i32 to vector<2x1x256xi32>
    %29 = arith.cmpi eq, %4, %28 : vector<2x1x256xi32>
    %30 = vector.extract_strided_slice %3 {offsets = [0, 2, 0], sizes = [2, 1, 256], strides = [1, 1, 1]} : vector<2x4x256xf32> to vector<2x1x256xf32>
    %31 = arith.select %29, %30, %25 : vector<2x1x256xi1>, vector<2x1x256xf32>
    %cst_12 = arith.constant 4.000000e-01 : f32
    %32 = vector.broadcast %cst_12 : f32 to vector<2x1x256xf32>
    %33 = arith.select %29, %32, %27 : vector<2x1x256xi1>, vector<2x1x256xf32>
    %c3_i32 = arith.constant 3 : i32
    %34 = vector.broadcast %c3_i32 : i32 to vector<2x1x256xi32>
    %35 = arith.cmpi eq, %4, %34 : vector<2x1x256xi32>
    %36 = vector.extract_strided_slice %3 {offsets = [0, 3, 0], sizes = [2, 1, 256], strides = [1, 1, 1]} : vector<2x4x256xf32> to vector<2x1x256xf32>
    %37 = arith.select %35, %36, %31 : vector<2x1x256xi1>, vector<2x1x256xf32>
    %cst_13 = arith.constant 4.000000e-01 : f32
    %38 = vector.broadcast %cst_13 : f32 to vector<2x1x256xf32>
    %39 = arith.select %35, %38, %33 : vector<2x1x256xi1>, vector<2x1x256xf32>
    %40 = arith.subf %37, %13 : vector<2x1x256xf32>
    %41 = math.exp %40 : vector<2x1x256xf32>
    %cst_14 = arith.constant 1.000000e-10 : f32
    %42 = vector.broadcast %cst_14 : f32 to vector<2x1x256xf32>
    %43 = arith.addf %41, %42 : vector<2x1x256xf32>
    %44 = math.log %43 : vector<2x1x256xf32>
    %cst_15 = arith.constant 1.000000e+00 : f32
    %45 = vector.broadcast %cst_15 : f32 to vector<2x1x256xf32>
    %46 = arith.subf %45, %43 : vector<2x1x256xf32>
    %cst_16 = arith.constant 1.000000e+00 : f32
    %47 = vector.broadcast %cst_16 : f32 to vector<2x1x256xf32>
    %48 = arith.mulf %47, %46 : vector<2x1x256xf32>
    %49 = arith.mulf %48, %46 : vector<2x1x256xf32>
    %cst_17 = arith.constant 0.000000e+00 : f32
    %50 = vector.broadcast %cst_17 : f32 to vector<2x1x256xf32>
    %51 = arith.subf %50, %49 : vector<2x1x256xf32>
    %52 = arith.mulf %51, %44 : vector<2x1x256xf32>
    %c0_18 = arith.constant 0 : index
    %c0_19 = arith.constant 0 : index
    %53 = vector.load %arg6[%c0_18, %c0_19] : memref<1x256xf32, #tpu.memory_space<vmem>>, vector<1x256xf32>
    %cst_20 = arith.constant dense<0.000000e+00> : vector<1x256xf32>
    %54 = vector.multi_reduction <add>, %52, %cst_20 [0] : vector<2x1x256xf32> to vector<1x256xf32>
    %55 = arith.addf %53, %54 : vector<1x256xf32>
    %c0_21 = arith.constant 0 : index
    %c0_22 = arith.constant 0 : index
    %56 = vector.load %arg6[%c0_21, %c0_22] : memref<1x256xf32, #tpu.memory_space<vmem>>, vector<1x256xf32>
    tpu.vector_store %arg6[%c0_21, %c0_22], %55 {strides = array<i32>} : memref<1x256xf32, #tpu.memory_space<vmem>>, vector<1x256xf32>,
    %c0_23 = arith.constant 0 : index
    %c0_24 = arith.constant 0 : index
    %57 = vector.load %arg7[%c0_23, %c0_24] : memref<1x256xf32, #tpu.memory_space<vmem>>, vector<1x256xf32>
    %cst_25 = arith.constant dense<0.000000e+00> : vector<1x256xf32>
    %58 = vector.multi_reduction <add>, %39, %cst_25 [0] : vector<2x1x256xf32> to vector<1x256xf32>
    %59 = arith.addf %57, %58 : vector<1x256xf32>
    %c0_26 = arith.constant 0 : index
    %c0_27 = arith.constant 0 : index
    %60 = vector.load %arg7[%c0_26, %c0_27] : memref<1x256xf32, #tpu.memory_space<vmem>>, vector<1x256xf32>
    tpu.vector_store %arg7[%c0_26, %c0_27], %59 {strides = array<i32>} : memref<1x256xf32, #tpu.memory_space<vmem>>, vector<1x256xf32>,
    %c0_i32_28 = arith.constant 0 : i32
    %61 = arith.cmpi eq, %arg1, %c0_i32_28 : i32
    %62 = arith.extui %61 : i1 to i32
    %c0_i32_29 = arith.constant 0 : i32
    %63 = arith.cmpi ne, %62, %c0_i32_29 : i32
    scf.if %63 {
      %cst_30 = arith.constant 0.000000e+00 : f32
      %64 = vector.broadcast %cst_30 : f32 to vector<1x8x128xf32>
      %c0_31 = arith.constant 0 : index
      %c0_32 = arith.constant 0 : index
      %65 = vector.load %arg6[%c0_31, %c0_32] : memref<1x256xf32, #tpu.memory_space<vmem>>, vector<1x256xf32>
      %66 = vector.shape_cast %65 : vector<1x256xf32> to vector<1x1x256xf32>
      %cst_33 = arith.constant dense<0.000000e+00> : vector<1xf32>
      %67 = vector.multi_reduction <add>, %66, %cst_33 [1, 2] : vector<1x1x256xf32> to vector<1xf32>
      %68 = vector.shape_cast %67 : vector<1xf32> to vector<1x1x1xf32>
      %69 = vector.extract %68[0, 0, 0] : f32 from vector<1x1x1xf32>
      %70 = vector.broadcast %69 : f32 to vector<1x8x128xf32>
      %71 = arith.addf %64, %70 : vector<1x8x128xf32>
      %c0_34 = arith.constant 0 : index
      %c0_35 = arith.constant 0 : index
      %c0_36 = arith.constant 0 : index
      %72 = vector.load %arg4[%c0_34, %c0_35, %c0_36] : memref<1x8x128xf32, #tpu.memory_space<vmem>>, vector<1x8x128xf32>
      tpu.vector_store %arg4[%c0_34, %c0_35, %c0_36], %71 {strides = array<i32>} : memref<1x8x128xf32, #tpu.memory_space<vmem>>, vector<1x8x128xf32>,
      %cst_37 = arith.constant 0.000000e+00 : f32
      %73 = vector.broadcast %cst_37 : f32 to vector<1x8x128xf32>
      %c0_38 = arith.constant 0 : index
      %c0_39 = arith.constant 0 : index
      %74 = vector.load %arg7[%c0_38, %c0_39] : memref<1x256xf32, #tpu.memory_space<vmem>>, vector<1x256xf32>
      %75 = vector.shape_cast %74 : vector<1x256xf32> to vector<1x1x256xf32>
      %cst_40 = arith.constant dense<0.000000e+00> : vector<1xf32>
      %76 = vector.multi_reduction <add>, %75, %cst_40 [1, 2] : vector<1x1x256xf32> to vector<1xf32>
      %77 = vector.shape_cast %76 : vector<1xf32> to vector<1x1x1xf32>
      %78 = vector.extract %77[0, 0, 0] : f32 from vector<1x1x1xf32>
      %79 = vector.broadcast %78 : f32 to vector<1x8x128xf32>
      %80 = arith.addf %73, %79 : vector<1x8x128xf32>
      %c0_41 = arith.constant 0 : index
      %c0_42 = arith.constant 0 : index
      %c0_43 = arith.constant 0 : index
      %81 = vector.load %arg5[%c0_41, %c0_42, %c0_43] : memref<1x8x128xf32, #tpu.memory_space<vmem>>, vector<1x8x128xf32>
      tpu.vector_store %arg5[%c0_41, %c0_42, %c0_43], %80 {strides = array<i32>} : memref<1x8x128xf32, #tpu.memory_space<vmem>>, vector<1x8x128xf32>,
    } else {
    }
    return
  }
  func.func @transform_0(%arg0: i32, %arg1: i32) -> (i32, i32, i32) {
    %c0_i32 = arith.constant 0 : i32
    %c0_i32_0 = arith.constant 0 : i32
    return %arg0, %c0_i32, %arg1 : i32, i32, i32
  }
  func.func @transform_1(%arg0: i32, %arg1: i32) -> (i32, i32, i32) {
    %c0_i32 = arith.constant 0 : i32
    %c0_i32_0 = arith.constant 0 : i32
    return %arg0, %c0_i32, %arg1 : i32, i32, i32
  }
  func.func @transform_2(%arg0: i32, %arg1: i32) -> (i32, i32, i32) {
    %c0_i32 = arith.constant 0 : i32
    %c0_i32_0 = arith.constant 0 : i32
    %c0_i32_1 = arith.constant 0 : i32
    return %arg0, %c0_i32, %c0_i32_0 : i32, i32, i32
  }
  func.func @transform_3(%arg0: i32, %arg1: i32) -> (i32, i32, i32) {
    %c0_i32 = arith.constant 0 : i32
    %c0_i32_0 = arith.constant 0 : i32
    %c0_i32_1 = arith.constant 0 : i32
    return %arg0, %c0_i32, %c0_i32_0 : i32, i32, i32
  }
}

</mosaic_0001>

<bundles_post_ra>
// kernel: tpu_custom_call.1
= control target key start
LH: loop header
LB: loop body
LE: loop exit
PB: predicated region body
PF: predicated region fallthrough
CT: control target
= control target key end

     0   :  { %9 = vsyncpa [#allocation5], 0  ;;  %s654_s0 = inlined_call_operand.hbm [shape: f32[2,4,256], index: 0, kind: input, shape index: {}]   ;;  %s655_s1 = inlined_call_operand.hbm [shape: s32[2,1,256], index: 1, kind: input, shape index: {}]   ;;  %s656_s2 = inlined_call_operand.hbm [shape: f32[1,8,128], index: 2, kind: output, shape index: {0}]   ;;  %s657_s3 = inlined_call_operand.hbm [shape: f32[1,8,128], index: 3, kind: output, shape index: {1}]  }
   0x1   :  { %10 = vsyncpa [#allocation8], 0 }
   0x2   :  { %11 = vsyncpa [#allocation6], 0 }
   0x3   :  { %12 = vsyncpa [#allocation11], 0  ;;  %s17_s14 = sshll.u32 %s654_s0, 4  ;;  %s525_s15 = smov [#allocation4]   ;;  %s18_s14 = int_to_ptr.hbm [resolvable:$true] %s17_s14 }
   0x4   :  { %s19_s16 = sshll.u32 %s525_s15, 4  ;;  %s30_s19 = sshll.u32 %s655_s1, 4  ;;  %s20_s16 = int_to_ptr.vmem [resolvable:$true] %s19_s16  ;;  %s31_s19 = int_to_ptr.hbm [resolvable:$true] %s30_s19 }
   0x5   :  { %s526_s20 = smov 128   ;;  %s527_s21 = smov 8  }
   0x6   :  { %25 = dma.hbm_to_vmem [thread:$0]  %s18_s14, 256, %s20_s16, [#allocation5], %s526_s20, %s526_s20, %s527_s21  }
   0x7   :  { %s528_s22 = smov [#allocation7]   ;;  %s529_s24 = smov 32  }
   0x8   :  { %s32_s23 = sshll.u32 %s528_s22, 4  ;;  %s530_s25 = smov 2   ;;  %s33_s23 = int_to_ptr.vmem [resolvable:$true] %s32_s23 }
   0x9   :  { %38 = dma.hbm_to_vmem [thread:$0]  %s31_s19, 64, %s33_s23, [#allocation8], %s529_s24, %s529_s24, %s530_s25  }
   0xa   :  { %517 = dma.done.wait [#allocation5], 256  }
   0xb   :  { %518 = vsyncadd [#allocation5], 4294967040 }
   0xc   :  { %519 = dma.done.wait [#allocation8], 64  }
   0xd   :  { %520 = vsyncadd [#allocation8], 4294967232  ;;  %v51_v0 = vlaneseq  ;;  %v531_v2 = vmov 0.0   ;;  %v570_v3 = vld [vmem:[#allocation4] sm:$0xff]  ;;  %v572_v4 = vld [vmem:[#allocation4 + $0x8] sm:$0xff]  ;;  %vm74_vm1 = vcmask 1043456  }
   0xe   :  { %63 = vst [vmem:[#allocation1] ss:$2 sm:$0xff] %v570_v3  ;;  %vm176_vm2 = vcmask 1040384   ;;  %s532_s0 = smov [#allocation9]   ;;  %s361_s28 = sshll.u32 %s656_s2, 4  ;;  %s362_s28 = int_to_ptr.hbm [resolvable:$true] %s361_s28 }
   0xf   :  { %vm560_vm0 = vcmp.lt.s32.totalorder %v51_v0, 256  ;;  %67 = vst [vmem:[#allocation1 + $0x10] ss:$2 sm:$0xff] %v572_v4  ;;  %s359_s1 = sshll.u32 %s532_s0, 4  ;;  %s533_s30 = smov [#allocation10]   ;;  %s360_s1 = int_to_ptr.vmem [resolvable:$true] %s359_s1 }
  0x10   :  { %55 = vst.msk [vmem:[#allocation2] sm:$0x3] %vm560_vm0, %v531_v2  ;;  %s370_s4 = sshll.u32 %s533_s30, 4  ;;  %s372_s7 = sshll.u32 %s657_s3, 4  ;;  %s371_s4 = int_to_ptr.vmem [resolvable:$true] %s370_s4  ;;  %s373_s7 = int_to_ptr.hbm [resolvable:$true] %s372_s7 }
  0x11   :  { %56 = vst.msk [vmem:[#allocation3] sm:$0x3] %vm560_vm0, %v531_v2 }
  0x12   :  { %190 = vst [vmem:[#allocation1 + $0x20] sm:$0xff] %v572_v4 }
  0x15   :  { %v64_v5 = vld.sshfl [vmem:[#allocation1] sm:$0xff pattern:$0x75316420]  ;;  %v65_v6 = vld.sshfl [vmem:[#allocation1 + $0x8] sm:$0xff pattern:$0x75316420] }
  0x16   :  { %v68_v7 = vld.sshfl [vmem:[#allocation1 + $0x10] sm:$0xff pattern:$0x75316420]  ;;  %v69_v8 = vld.sshfl [vmem:[#allocation1 + $0x18] sm:$0xff pattern:$0x75316420] }
  0x17   :  { %v75_v9 = vsel %vm74_vm1, %v64_v5, -inf  ;;  %v82_v10 = vsel %vm74_vm1, %v65_v6, -inf  ;;  %v89_v11 = vsel %vm74_vm1, %v68_v7, -inf  ;;  %v96_v12 = vsel %vm74_vm1, %v69_v8, -inf }
  0x18   :  { %v76_v13 = vrot.slane %v75_v9, 4  ;;  %v83_v14 = vrot.slane %v82_v10, 4  ;;  %v90_v15 = vrot.slane %v89_v11, 4  ;;  %v97_v16 = vrot.slane %v96_v12, 4 }
  0x19   :  { %v597_v43 = vld [vmem:[#allocation1 + $0x21] ss:$4 sm:$0xff] }
  0x1a   :  { %v77_v17 = vmax.f32 %v75_v9, %v76_v13  ;;  %v84_v18 = vmax.f32 %v82_v10, %v83_v14  ;;  %v91_v19 = vmax.f32 %v89_v11, %v90_v15  ;;  %v98_v20 = vmax.f32 %v96_v12, %v97_v16  ;;  %204 = vst [vmem:[#allocation1 + $0x20] sm:$0xff] %v572_v4 }
  0x1b   :  { %v174_v14 = vrot.slane %v570_v3, 3 }
  0x1c   :  { %v78_v21 = vrot.slane %v77_v17, 2  ;;  %v85_v22 = vrot.slane %v84_v18, 2  ;;  %v92_v23 = vrot.slane %v91_v19, 2  ;;  %v99_v24 = vrot.slane %v98_v20, 2 }
  0x1e   :  { %v79_v25 = vmax.f32 %v77_v17, %v78_v21  ;;  %v86_v26 = vmax.f32 %v84_v18, %v85_v22  ;;  %v93_v27 = vmax.f32 %v91_v19, %v92_v23  ;;  %v100_v28 = vmax.f32 %v98_v20, %v99_v24  ;;  %v59_v19 = vld [vmem:[#allocation7] sm:$0x3]  ;;  %v60_v21 = vld [vmem:[#allocation7 + $0x2] sm:$0x3] }
  0x1f   :  { %v175_v20 = vrot.slane %v572_v4, 3  ;;  %vm172_vm3 = vcmp.eq.s32.totalorder %v59_v19, 0  ;;  %vm173_vm4 = vcmp.eq.s32.totalorder %v60_v21, 0  ;;  %vm185_vm5 = vcmp.eq.s32.totalorder %v59_v19, 1 }
  0x20   :  { %v80_v29 = vrot.slane %v79_v25, 1  ;;  %v87_v30 = vrot.slane %v86_v26, 1  ;;  %v94_v31 = vrot.slane %v93_v27, 1  ;;  %v101_v32 = vrot.slane %v100_v28, 1 }
  0x21   :  { %v600_v46 = vld [vmem:[#allocation1 + $0x22] ss:$4 sm:$0xff]  ;;  %vm186_vm6 = vcmp.eq.s32.totalorder %v60_v21, 1  ;;  %vm199_vm7 = vcmp.eq.s32.totalorder %v59_v19, 2  ;;  %vm200_vm8 = vcmp.eq.s32.totalorder %v60_v21, 2  ;;  %vm213_vm9 = vcmp.eq.s32.totalorder %v59_v19, 3 }
  0x22   :  { %v581_v33 = vmax.f32 %v79_v25, %v80_v29  ;;  %v583_v34 = vmax.f32 %v86_v26, %v87_v30  ;;  %v585_v35 = vmax.f32 %v93_v27, %v94_v31  ;;  %v587_v36 = vmax.f32 %v100_v28, %v101_v32  ;;  %218 = vst [vmem:[#allocation1 + $0x20] sm:$0xff] %v572_v4 }
  0x23   :  { %v177_v26 = vsel %vm176_vm2, %v570_v3, %v174_v14  ;;  %v178_v27 = vsel %vm176_vm2, %v572_v4, %v175_v20  ;;  %v183_v31 = vsel %vm172_vm3, 0.6, %v531_v2  ;;  %v184_v32 = vsel %vm173_vm4, 0.6, %v531_v2 }
  0x24   :  { %v107_v37 = vrot.slane %v583_v34, 4  ;;  %v108_v38 = vrot.slane %v587_v36, 4  ;;  %v181_v29 = vsel %vm172_vm3, %v177_v26, 0.0  ;;  %v182_v30 = vsel %vm173_vm4, %v178_v27, 0.0 }
  0x25   :  { %vm214_vm10 = vcmp.eq.s32.totalorder %v60_v21, 3 }
  0x26   :  { %v109_v39 = vsel %vm74_vm1, %v581_v33, %v107_v37  ;;  %v110_v40 = vsel %vm74_vm1, %v585_v35, %v108_v38 }
  0x27   :  { %v113_v41 = vsub.f32 %v570_v3, %v109_v39  ;;  %v114_v42 = vsub.f32 %v572_v4, %v110_v40  ;;  %v196_v4 = vsel %vm186_vm6, %v597_v43, %v182_v30 }
  0x29   :  { %v115_v44 = vmul.f32 1.442695, %v113_v41  ;;  %v117_v45 = vmul.f32 1.442695, %v114_v42 }
  0x2b   :  { %401 = vpow2.f32 %v115_v44  ;;  %v197_v44 = vsel %vm185_vm5, 0.4, %v183_v31 }
  0x2c   :  { %403 = vpow2.f32 %v117_v45  ;;  %v198_v45 = vsel %vm186_vm6, 0.4, %v184_v32 }
  0x31   :  { %v402_v47 = vpop.eup %401 }
  0x32   :  { %v404_v48 = vpop.eup %403  ;;  %121 = vst [vmem:[#allocation1] ss:$2 sm:$0xff] %v402_v47 }
  0x33   :  { %125 = vst [vmem:[#allocation1 + $0x10] ss:$2 sm:$0xff] %v404_v48 }
  0x39   :  { %v122_v49 = vld.sshfl [vmem:[#allocation1] sm:$0xff pattern:$0x75316420]  ;;  %v123_v50 = vld.sshfl [vmem:[#allocation1 + $0x8] sm:$0xff pattern:$0x75316420] }
  0x3a   :  { %v126_v51 = vld.sshfl [vmem:[#allocation1 + $0x10] sm:$0xff pattern:$0x75316420]  ;;  %v127_v52 = vld.sshfl [vmem:[#allocation1 + $0x18] sm:$0xff pattern:$0x75316420] }
  0x3b   :  { %v132_v53 = vsel %vm74_vm1, %v122_v49, 0.0  ;;  %v139_v54 = vsel %vm74_vm1, %v123_v50, 0.0  ;;  %v146_v55 = vsel %vm74_vm1, %v126_v51, 0.0  ;;  %v153_v56 = vsel %vm74_vm1, %v127_v52, 0.0  ;;  %187 = vst [vmem:[#allocation1] sm:$0xff] %v570_v3 }
  0x3c   :  { %v133_v57 = vrot.slane %v132_v53, 4  ;;  %v140_v58 = vrot.slane %v139_v54, 4  ;;  %v147_v59 = vrot.slane %v146_v55, 4  ;;  %v154_v60 = vrot.slane %v153_v56, 4  ;;  %v220_v52 = vld [vmem:[#allocation1 + $0x23] ss:$4 sm:$0xff] }
  0x3d   :  { %v210_v51 = vsel %vm200_vm8, %v600_v46, %v196_v4 }
  0x3e   :  { %v134_v61 = vadd.f32 %v133_v57, %v132_v53  ;;  %v141_v62 = vadd.f32 %v140_v58, %v139_v54  ;;  %v148_v63 = vadd.f32 %v147_v59, %v146_v55  ;;  %v155_v0 = vadd.f32 %v154_v60, %v153_v56 }
  0x3f   :  { %v211_v53 = vsel %vm199_vm7, 0.4, %v197_v44  ;;  %v212_v54 = vsel %vm200_vm8, 0.4, %v198_v45  ;;  %v224_v59 = vsel %vm214_vm10, %v220_v52, %v210_v51 }
  0x40   :  { %v135_v5 = vrot.slane %v134_v61, 2  ;;  %v142_v6 = vrot.slane %v141_v62, 2  ;;  %v149_v7 = vrot.slane %v148_v63, 2  ;;  %v156_v8 = vrot.slane %v155_v0, 2 }
  0x41   :  { %v225_v60 = vsel %vm213_vm9, 0.4, %v211_v53 }
  0x42   :  { %v136_v9 = vadd.f32 %v135_v5, %v134_v61  ;;  %v143_v10 = vadd.f32 %v142_v6, %v141_v62  ;;  %v150_v11 = vadd.f32 %v149_v7, %v148_v63  ;;  %v157_v12 = vadd.f32 %v156_v8, %v155_v0  ;;  %v189_v13 = vld [vmem:[#allocation1 + $0x1] ss:$4 sm:$0xff] }
  0x43   :  { %201 = vst [vmem:[#allocation1] sm:$0xff] %v570_v3  ;;  %v195_v38 = vsel %vm185_vm5, %v189_v13, %v181_v29  ;;  %v289_v5 = vperm.slane %v225_v60, 1 }
  0x44   :  { %v137_v15 = vrot.slane %v136_v9, 1  ;;  %v144_v16 = vrot.slane %v143_v10, 1  ;;  %v151_v17 = vrot.slane %v150_v11, 1  ;;  %v158_v18 = vrot.slane %v157_v12, 1 }
  0x46   :  { %v138_v22 = vadd.f32 %v137_v15, %v136_v9  ;;  %v145_v23 = vadd.f32 %v144_v16, %v143_v10  ;;  %v152_v24 = vadd.f32 %v151_v17, %v150_v11  ;;  %v159_v25 = vadd.f32 %v158_v18, %v157_v12  ;;  %v285_v15 = vld [vmem:[#allocation3] sm:$0x3] }
  0x48   :  { %405 = vlog2.f32 %v138_v22 }
  0x49   :  { %407 = vlog2.f32 %v145_v23 }
  0x4a   :  { %409 = vlog2.f32 %v152_v24  ;;  %v203_v28 = vld [vmem:[#allocation1 + $0x2] ss:$4 sm:$0xff] }
  0x4b   :  { %411 = vlog2.f32 %v159_v25  ;;  %215 = vst [vmem:[#allocation1] sm:$0xff] %v570_v3  ;;  %v209_v48 = vsel %vm199_vm7, %v203_v28, %v195_v38 }
  0x4e   :  { %v406_v37 = vpop.eup %405 }
  0x4f   :  { %v408_v39 = vpop.eup %407  ;;  %v161_v40 = vmul.f32 0.6931472, %v406_v37 }
  0x50   :  { %v410_v41 = vpop.eup %409  ;;  %v163_v42 = vmul.f32 0.6931472, %v408_v39 }
  0x51   :  { %v412_v47 = vpop.eup %411  ;;  %v165_v3 = vmul.f32 0.6931472, %v410_v41  ;;  %v168_v2 = vadd.f32 %v161_v40, %v581_v33  ;;  %v226_v33 = vsel %vm214_vm10, 0.4, %v212_v54 }
  0x52   :  { %v167_v49 = vmul.f32 0.6931472, %v412_v47  ;;  %v169_v50 = vadd.f32 %v163_v42, %v583_v34  ;;  %v217_v43 = vld [vmem:[#allocation1 + $0x3] ss:$4 sm:$0xff]  ;;  %v291_v6 = vperm.slane %v226_v33, 1  ;;  %v290_v8 = vperm.slane %v226_v33, 0 }
  0x53   :  { %v170_v55 = vadd.f32 %v165_v3, %v585_v35  ;;  %v223_v57 = vsel %vm213_vm9, %v217_v43, %v209_v48  ;;  %v288_v35 = vperm.slane %v225_v60, 0  ;;  %v257_v48 = vld [vmem:[#allocation2] sm:$0x3] }
  0x54   :  { %v171_v56 = vadd.f32 %v167_v49, %v587_v36  ;;  %v231_v58 = vrot.slane %v169_v50, 7  ;;  %v299_v36 = vsel %vm176_vm2, %v289_v5, 0.0  ;;  %v300_v9 = vsel %vm176_vm2, %v291_v6, 0.0 }
  0x55   :  { %v296_v10 = vsel %vm176_vm2, %v288_v35, 0.0  ;;  %v297_v11 = vsel %vm176_vm2, %v290_v8, 0.0  ;;  %v301_v12 = vadd.f32 %v300_v9, %v299_v36 }
  0x56   :  { %v232_v61 = vrot.slane %v171_v56, 7  ;;  %v233_v34 = vsel %vm176_vm2, %v168_v2, %v231_v58  ;;  %v298_v13 = vadd.f32 %v297_v11, %v296_v10 }
  0x57   :  { %v237_v62 = vsub.f32 %v223_v57, %v233_v34  ;;  %v304_v14 = vrot.slane %v301_v12, 7 }
  0x58   :  { %v234_v46 = vsel %vm176_vm2, %v170_v55, %v232_v61 }
  0x59   :  { %v238_v63 = vsub.f32 %v224_v59, %v234_v46  ;;  %v239_v0 = vmul.f32 1.442695, %v237_v62  ;;  %v305_v17 = vsel %vm176_vm2, %v298_v13, %v304_v14 }
  0x5a   :  { %v307_v19 = vadd.f32 %v305_v17, %v285_v15 }
  0x5b   :  { %413 = vpow2.f32 %v239_v0  ;;  %v241_v7 = vmul.f32 1.442695, %v238_v63 }
  0x5c   :  { %308 = vst.msk [vmem:[#allocation3] sm:$0x3] %vm560_vm0, %v307_v19 }
  0x5d   :  { %415 = vpow2.f32 %v241_v7 }
  0x61   :  { %v414_v16 = vpop.eup %413 }
  0x62   :  { %v243_v18 = vadd.f32 1e-10, %v414_v16 }
  0x63   :  { %v416_v20 = vpop.eup %415  ;;  %v333_v43 = vld [vmem:[#allocation3] sm:$0x3] }
  0x64   :  { %v244_v21 = vadd.f32 1e-10, %v416_v20  ;;  %417 = vlog2.f32 %v243_v18  ;;  %v249_v22 = vsub.f32 1.0, %v243_v18  ;;  %v335_v56 = vperm.slane %v333_v43, 0 }
  0x65   :  { %v336_v57 = vperm.slane %v333_v43, 1 }
  0x66   :  { %419 = vlog2.f32 %v244_v21  ;;  %v250_v23 = vsub.f32 1.0, %v244_v21  ;;  %v251_v24 = vmul.f32 %v249_v22, %v249_v22  ;;  %v339_v59 = vsel %vm176_vm2, %v335_v56, 0.0 }
  0x67   :  { %v340_v60 = vsel %vm176_vm2, %v336_v57, 0.0 }
  0x68   :  { %v252_v25 = vmul.f32 %v250_v23, %v250_v23  ;;  %v253_v26 = vsub.f32 0.0, %v251_v24  ;;  %v341_v33 = vadd.f32 %v340_v60, %v339_v59 }
  0x6a   :  { %v418_v27 = vpop.eup %417  ;;  %v254_v29 = vsub.f32 0.0, %v252_v25 }
  0x6b   :  { %v246_v28 = vmul.f32 0.6931472, %v418_v27 }
  0x6c   :  { %v420_v30 = vpop.eup %419 }
  0x6d   :  { %v248_v31 = vmul.f32 0.6931472, %v420_v30  ;;  %v255_v32 = vmul.f32 %v253_v26, %v246_v28 }
  0x6f   :  { %v256_v37 = vmul.f32 %v254_v29, %v248_v31  ;;  %v260_v38 = vperm.slane %v255_v32, 0  ;;  %v261_v39 = vperm.slane %v255_v32, 1 }
  0x71   :  { %v262_v40 = vperm.slane %v256_v37, 0  ;;  %v263_v4 = vperm.slane %v256_v37, 1  ;;  %v268_v41 = vsel %vm176_vm2, %v260_v38, 0.0  ;;  %v271_v42 = vsel %vm176_vm2, %v261_v39, 0.0 }
  0x73   :  { %v269_v44 = vsel %vm176_vm2, %v262_v40, 0.0  ;;  %v272_v45 = vsel %vm176_vm2, %v263_v4, 0.0 }
  0x74   :  { %v270_v47 = vadd.f32 %v269_v44, %v268_v41  ;;  %v273_v3 = vadd.f32 %v272_v45, %v271_v42 }
  0x76   :  { %v276_v49 = vrot.slane %v273_v3, 7 }
  0x78   :  { %v277_v2 = vsel %vm176_vm2, %v270_v47, %v276_v49 }
  0x79   :  { %v279_v50 = vadd.f32 %v277_v2, %v257_v48 }
  0x7b   :  { %284 = vst.msk [vmem:[#allocation2] sm:$0x3] %vm560_vm0, %v279_v50 }
  0x82   :  { %v312_v51 = vld [vmem:[#allocation2] sm:$0x3] }
  0x83   :  { %v314_v52 = vperm.slane %v312_v51, 0  ;;  %v315_v53 = vperm.slane %v312_v51, 1 }
  0x85   :  { %v318_v54 = vsel %vm176_vm2, %v314_v52, 0.0  ;;  %v319_v55 = vsel %vm176_vm2, %v315_v53, 0.0 }
  0x86   :  { %v320_v58 = vadd.f32 %v319_v55, %v318_v54 }
  0x88   :  { %321 = vadd.xlane.f32.xlu0 %v320_v58 }
  0x90   :  { %342 = vadd.xlane.f32.xlu0 %v341_v33 }
  0xfb   :  { %v322_v1 = vpop.xlane.xlu0 %321 }
  0xfc   :  { %v323_v61 = vrot.slane %v322_v1, 4 }
  0xfe   :  { %v324_v34 = vadd.f32 %v323_v61, %v322_v1 }
 0x100   :  { %v325_v62 = vrot.slane %v324_v34, 2 }
 0x102   :  { %v326_v46 = vadd.f32 %v325_v62, %v324_v34 }
 0x103   :  { %v343_v63 = vpop.xlane.xlu0 %342 }
 0x104   :  { %v344_v0 = vrot.slane %v343_v63, 4  ;;  %v327_v5 = vrot.slane %v326_v46, 1 }
 0x106   :  { %v345_v6 = vadd.f32 %v344_v0, %v343_v63  ;;  %v328_v7 = vadd.f32 %v327_v5, %v326_v46 }
 0x108   :  { %v346_v35 = vrot.slane %v345_v6, 2  ;;  %388 = vpush %v328_v7 }
 0x10a   :  { %v347_v8 = vadd.f32 %v346_v35, %v345_v6 }
 0x10c   :  { %v348_v36 = vrot.slane %v347_v8, 1 }
 0x10e   :  { %v349_v9 = vadd.f32 %v348_v36, %v347_v8 }
 0x110   :  { %390 = vpush %v349_v9 }
 0x139   :  { %s389_s29 = spop %388 }
 0x13a   :  { %v330_v10 = vstv %s389_s29 }
 0x13b   :  { %332 = vst [vmem:[#allocation9] sm:$0xff] %v330_v10 }
 0x13c   :  { %364 = dma.vmem_to_hbm [thread:$0]  %s360_s1, 128, %s362_s28, [#allocation6]  }
 0x141   :  { %s391_s8 = spop %390 }
 0x142   :  { %v351_v11 = vstv %s391_s8 }
 0x143   :  { %353 = vst [vmem:[#allocation10] sm:$0xff] %v351_v11 }
 0x144   :  { %375 = dma.vmem_to_hbm [thread:$0]  %s371_s4, 128, %s373_s7, [#allocation11]  }
 0x145   :  { %521 = dma.done.wait [#allocation6], 128  }
 0x146   :  { %522 = vsyncadd [#allocation6], 4294967168 }
 0x147   :  { %523 = dma.done.wait [#allocation11], 128  }
 0x148   :  { %524 = vsyncadd [#allocation11], 4294967168 }
 0x149   :  { %384 = vsyncpa [#allocation5], 1 }
 0x14a   :  { %385 = vsyncpa [#allocation8], 1 }
 0x14b   :  { %386 = vsyncpa [#allocation6], 1 }
 0x14c   :  { %387 = vsyncpa [#allocation11], 1 }

</bundles_post_ra>
